<compile_context>
chip_gen: v7x
topology: tpu7x:2x2x1
jax: 0.10.0
libtpu: 0.0.40
codegen_flags: <defaults>
</compile_context>

<pallas_src>
import jax
import jax.numpy as jnp
from jax.experimental import pallas as pl
from jax.experimental.pallas import tpu as pltpu

LANE = 128
HIDDEN = 10


def mlp_kernel(x_ref, p_ref, o_ref):
    # x_ref: (1, BN)      batch on the lane axis
    # p_ref: (HIDDEN, 4)  columns = [w1 | b1 | w2 | b2]
    # o_ref: (1, BN)      lane-dense output row
    x = x_ref[...]                                   # (1, BN)
    w1 = p_ref[:, 0:1]                               # (HIDDEN, 1)
    b1 = p_ref[:, 1:2]                               # (HIDDEN, 1)
    w2 = p_ref[:, 2:3]                               # (HIDDEN, 1)
    b2 = p_ref[0:1, 3:4]                             # (1, 1)

    # fc1 as an outer product on the VPU, sigmoid on the EUP.
    h = jax.nn.sigmoid(w1 * x + b1)                  # (HIDDEN, BN)
    # fc2 as a weighted sublane reduction (XLU), plus scalar bias broadcast.
    y = jnp.sum(w2 * h, axis=0, keepdims=True) + b2  # (1, BN)

    o_ref[...] = y.astype(o_ref.dtype)


def _pack_params(fc1_w, fc1_b, fc2_w, fc2_b):
    # fc1_w: (10, 1), fc1_b: (10,), fc2_w: (1, 10), fc2_b: (1,)
    return jnp.stack(
        [
            fc1_w[:, 0],
            fc1_b,
            fc2_w[0, :],
            jnp.broadcast_to(fc2_b, (HIDDEN,)),
        ],
        axis=1,
    ).astype(jnp.float32)                            # (HIDDEN, 4)


def net_forward(x, fc1_w, fc1_b, fc2_w, fc2_b, *, block_n=2048):
    """x: (N, 1) float32 -> (N, 1) float32 (same math as the PyTorch Net)."""
    n = x.shape[0]
    params = _pack_params(fc1_w, fc1_b, fc2_w, fc2_b)

    # Pad the batch to a multiple of the lane-major tile width.
    n_up = ((n + LANE - 1) // LANE) * LANE
    bn = min(block_n, n_up)                           # multiple of 128
    n_pad = ((n_up + bn - 1) // bn) * bn
    x_row = jnp.pad(x.reshape(1, n).astype(jnp.float32),
                    ((0, 0), (0, n_pad - n)))         # (1, n_pad)

    out_row = pl.pallas_call(
        mlp_kernel,
        out_shape=jax.ShapeDtypeStruct((1, n_pad), jnp.float32),
        grid=(n_pad // bn,),
        in_specs=[
            pl.BlockSpec((1, bn), lambda i: (0, i)),          # x tile
            pl.BlockSpec((HIDDEN, 4), lambda i: (0, 0)),      # resident params
        ],
        out_specs=pl.BlockSpec((1, bn), lambda i: (0, i)),
        compiler_params=pltpu.CompilerParams(
            dimension_semantics=("parallel",)),
    )(x_row, params)

    return out_row[0, :n].reshape(n, 1)


def init_params(key):
    # PyTorch-style uniform init: bound = 1/sqrt(fan_in).
    k1, k2, k3, k4 = jax.random.split(key, 4)
    bound1 = 1.0                      # fc1 fan_in = 1
    bound2 = 1.0 / jnp.sqrt(10.0)     # fc2 fan_in = 10
    fc1_w = jax.random.uniform(k1, (10, 1), jnp.float32, -bound1, bound1)
    fc1_b = jax.random.uniform(k2, (10,), jnp.float32, -bound1, bound1)
    fc2_w = jax.random.uniform(k3, (1, 10), jnp.float32, -bound2, bound2)
    fc2_b = jax.random.uniform(k4, (1,), jnp.float32, -bound2, bound2)
    return fc1_w, fc1_b, fc2_w, fc2_b


if __name__ == "__main__":
    key = jax.random.PRNGKey(0)
    kx, kp = jax.random.split(key)

    batch = 8
    x = jax.random.normal(kx, (batch, 1), jnp.float32)
    fc1_w, fc1_b, fc2_w, fc2_b = init_params(kp)

    out = net_forward(x, fc1_w, fc1_b, fc2_w, fc2_b)
    out = jax.block_until_ready(out)

    # Reference in plain JAX (same math as the PyTorch forward).
    ref = jax.nn.sigmoid(x @ fc1_w.T + fc1_b) @ fc2_w.T + fc2_b
    assert out.shape == (batch, 1)
    assert jnp.allclose(out, ref, atol=1e-5, rtol=1e-5)

    print("KERNEL_OK")
</pallas_src>

<mosaic_0001>
module attributes {stable_mosaic.version = 11 : i64} {
  func.func @mlp_kernel(%arg0: i32, %arg1: memref<1x128xf32, #tpu.memory_space<vmem>>, %arg2: memref<10x4xf32, #tpu.memory_space<vmem>>, %arg3: memref<1x128xf32, #tpu.memory_space<vmem>>) attributes {dimension_semantics = [#tpu.dimension_semantics<parallel>], iteration_bounds = array<i64: 1>, scalar_prefetch = 0 : i64, scratch_operands = 0 : i64, tpu.core_type = #tpu.core_type<tc>, window_params = [{transform_indices = @transform_0, window_bounds = array<i64: 1, 128>}, {pipeline_mode = #tpu.pipeline_mode<synchronous>, transform_indices = @transform_1, window_bounds = array<i64: 10, 4>}, {transform_indices = @transform_2, window_bounds = array<i64: 1, 128>}]} {
    %c0 = arith.constant 0 : index
    %c0_0 = arith.constant 0 : index
    %0 = vector.load %arg1[%c0, %c0_0] : memref<1x128xf32, #tpu.memory_space<vmem>>, vector<1x128xf32>
    %c0_1 = arith.constant 0 : index
    %c0_2 = arith.constant 0 : index
    %1 = vector.load %arg2[%c0_1, %c0_2] : memref<10x4xf32, #tpu.memory_space<vmem>>, vector<10x1xf32>
    %c0_3 = arith.constant 0 : index
    %c1 = arith.constant 1 : index
    %2 = vector.load %arg2[%c0_3, %c1] : memref<10x4xf32, #tpu.memory_space<vmem>>, vector<10x1xf32>
    %c0_4 = arith.constant 0 : index
    %c2 = arith.constant 2 : index
    %3 = vector.load %arg2[%c0_4, %c2] : memref<10x4xf32, #tpu.memory_space<vmem>>, vector<10x1xf32>
    %c0_5 = arith.constant 0 : index
    %c3 = arith.constant 3 : index
    %4 = vector.load %arg2[%c0_5, %c3] : memref<10x4xf32, #tpu.memory_space<vmem>>, vector<1x1xf32>
    %5 = vector.broadcast %1 : vector<10x1xf32> to vector<10x128xf32>
    %6 = vector.broadcast %0 : vector<1x128xf32> to vector<10x128xf32>
    %7 = arith.mulf %5, %6 : vector<10x128xf32>
    %8 = vector.broadcast %2 : vector<10x1xf32> to vector<10x128xf32>
    %9 = arith.addf %7, %8 : vector<10x128xf32>
    %10 = arith.negf %9 : vector<10x128xf32>
    %11 = math.exp %10 : vector<10x128xf32>
    %cst = arith.constant 1.000000e+00 : f32
    %12 = vector.broadcast %cst : f32 to vector<10x128xf32>
    %13 = arith.addf %12, %11 : vector<10x128xf32>
    %14 = arith.divf %12, %13 : vector<10x128xf32>
    %15 = vector.broadcast %3 : vector<10x1xf32> to vector<10x128xf32>
    %16 = arith.mulf %15, %14 : vector<10x128xf32>
    %cst_6 = arith.constant dense<0.000000e+00> : vector<128xf32>
    %17 = vector.multi_reduction <add>, %16, %cst_6 [0] : vector<10x128xf32> to vector<128xf32>
    %18 = vector.shape_cast %17 : vector<128xf32> to vector<1x128xf32>
    %19 = vector.broadcast %4 : vector<1x1xf32> to vector<1x128xf32>
    %20 = arith.addf %18, %19 : vector<1x128xf32>
    %c0_7 = arith.constant 0 : index
    %c0_8 = arith.constant 0 : index
    %21 = vector.load %arg3[%c0_7, %c0_8] : memref<1x128xf32, #tpu.memory_space<vmem>>, vector<1x128xf32>
    tpu.vector_store %arg3[%c0_7, %c0_8], %20 {strides = array<i32>} : memref<1x128xf32, #tpu.memory_space<vmem>>, vector<1x128xf32>,
    return
  }
  func.func @transform_0(%arg0: i32) -> (i32, i32) {
    %c0_i32 = arith.constant 0 : i32
    %c0_i32_0 = arith.constant 0 : i32
    return %c0_i32, %arg0 : i32, i32
  }
  func.func @transform_1(%arg0: i32) -> (i32, i32) {
    %c0_i32 = arith.constant 0 : i32
    %c0_i32_0 = arith.constant 0 : i32
    %c0_i32_1 = arith.constant 0 : i32
    return %c0_i32, %c0_i32_0 : i32, i32
  }
  func.func @transform_2(%arg0: i32) -> (i32, i32) {
    %c0_i32 = arith.constant 0 : i32
    %c0_i32_0 = arith.constant 0 : i32
    return %c0_i32, %arg0 : i32, i32
  }
}

</mosaic_0001>

<bundles_post_ra>
// kernel: tpu_custom_call.1
= control target key start
LH: loop header
LB: loop body
LE: loop exit
PB: predicated region body
PF: predicated region fallthrough
CT: control target
= control target key end

     0   :  { %v142_v1 = vmov 1   ;;  %v143_v2 = vmov 0   ;;  %s186_s0 = inlined_call_operand.vmem [shape: f32[1,128], index: 0, kind: input, shape index: {}]   ;;  %s187_s1 = inlined_call_operand.vmem [shape: f32[10,4], index: 1, kind: input, shape index: {}]   ;;  %s188_s2 = inlined_call_operand.hbm [shape: f32[1,128], index: 2, kind: output, shape index: {}]  }
   0x1   :  { %v14_v0 = vld [vmem:[%s187_s1 + $0x8] sm:$0x3]  ;;  %105 = vset.pattern.permute.xlu1 %v142_v1  ;;  %104 = vset.pattern.permute.xlu0 %v143_v2 }
   0x2   :  { %39 = vperm.xlu1 %105, %v14_v0   ;;  %23 = vperm.xlu0 %104, %v14_v0  }
   0x3   :  { %7 = vsyncpa [#allocation3], 0  ;;  %v13_v3 = vld [vmem:[%s187_s1] sm:$0xff]  ;;  %v144_v4 = vmov 2   ;;  %v145_v6 = vmov 3   ;;  %vm66_vm0 = vcmask 1041408  }
   0x4   :  { %v15_v5 = vld [vmem:[%s187_s1] sm:$0x1] }
   0x5   :  { %v96_v7 = vld [vmem:[%s186_s0] ss:$0 sm:$0xff]  ;;  %s146_s0 = smov [#allocation2]  }
   0x6   :  { %35 = vperm.xlu1 %105, %v13_v3   ;;  %18 = vperm.xlu0 %104, %v13_v3   ;;  %s88_s1 = sshll.u32 %s146_s0, 4  ;;  %s89_s1 = int_to_ptr.vmem [resolvable:$true] %s88_s1 }
   0x7   :  { %s118_s17 = scalar_lea.vmem %s89_s1, 16  ;;  %s122_s18 = scalar_lea.vmem %s89_s1, 32 }
   0x8   :  { %p119_p0 = scmp.ne.s32.totalorder %s89_s1, %s118_s17  ;;  %p123_p1 = scmp.lt.s32.totalorder %s89_s1, %s89_s1 }
   0x9   :  { %p124_p2 = scmp.lt.s32.totalorder %s122_s18, %s118_s17 }
   0xa   :  { %106 = vset.pattern.permute.xlu0 %v144_v4  ;;  %107 = vset.pattern.permute.xlu1 %v144_v4 }
   0xb   :  { %61 = vperm.xlu0 %106, %v14_v0   ;;  %57 = vperm.xlu1 %107, %v13_v3   ;;  %p125_p3 = por %p124_p2, %p123_p1 }
   0xd   :  { %p126_p4 = pnand %p125_p3, %p119_p0 }
   0xf   :  { %108 = vset.pattern.permute.xlu1 %v145_v6  ;;  %109 = vset.pattern.permute.xlu0 %v145_v6 }
  0x10   :  { %77 = vperm.xlu1 %108, %v15_v5  }
  0x81   :  { %v40_v8 = vpop.permute.xlu1 %39  ;;  %v24_v9 = vpop.permute.xlu0 %23 }
  0x82   :  { %v33_v10 = vmul.f32 %v96_v7, %v24_v9 }
  0x84   :  { %v43_v11 = vadd.f32 %v40_v8, %v33_v10 }
  0x85   :  { %v19_v12 = vpop.permute.xlu0 %18  ;;  %v36_v15 = vpop.permute.xlu1 %35 }
  0x86   :  { %v98_v13 = vmul.f32 -1.442695, %v43_v11  ;;  %v32_v14 = vmul.f32 %v96_v7, %v19_v12 }
  0x88   :  { %110 = vpow2.f32 %v98_v13  ;;  %v42_v16 = vadd.f32 %v36_v15, %v32_v14 }
  0x8a   :  { %v97_v17 = vmul.f32 -1.442695, %v42_v16  ;;  %v62_v22 = vpop.permute.xlu0 %61  ;;  %v58_v25 = vpop.permute.xlu1 %57 }
  0x8c   :  { %112 = vpow2.f32 %v97_v17 }
  0x8f   :  { %v78_v35 = vpop.permute.xlu1 %77 }
  0x92   :  { %v111_v18 = vpop.eup %110 }
  0x93   :  { %v51_v19 = vadd.f32 1.0, %v111_v18 }
  0x95   :  { %114 = vrcp.f32 %v51_v19 }
  0x96   :  { %v113_v20 = vpop.eup %112 }
  0x97   :  { %v50_v21 = vadd.f32 1.0, %v113_v20 }
  0x99   :  { %116 = vrcp.f32 %v50_v21 }
  0x9f   :  { %v115_v23 = vpop.eup %114 }
  0xa0   :  { %v65_v24 = vmul.f32 %v115_v23, %v62_v22 }
  0xa2   :  { %v67_v28 = vsel %vm66_vm0, %v65_v24, 0.0 }
  0xa3   :  { %v117_v26 = vpop.eup %116 }
  0xa4   :  { %v64_v27 = vmul.f32 %v117_v26, %v58_v25 }
  0xa6   :  { %v68_v29 = vadd.f32 %v67_v28, %v64_v27 }
  0xa8   :  { %v69_v30 = vrot.slane %v68_v29, 4 }
  0xaa   :  { %v70_v31 = vadd.f32 %v69_v30, %v68_v29 }
  0xac   :  { %v71_v32 = vrot.slane %v70_v31, 2 }
  0xae   :  { %v72_v33 = vadd.f32 %v71_v32, %v70_v31 }
  0xb0   :  { %v73_v34 = vrot.slane %v72_v33, 1 }
  0xb2   :  { %v74_v36 = vadd.f32 %v73_v34, %v72_v33 }
  0xb4   :  { %v80_v37 = vadd.f32 %v78_v35, %v74_v36 }
  0xb6   :  { %81 = vst [vmem:[#allocation2] sm:$0x1] %v80_v37 }
  0xb7   :  { %129 = shalt.err (!%p126_p4)
}
  0xb8   :  { %s130_s21 = scalar_lea.hbm %s188_s2, 16 }
  0xb9   :  { %p131_p5 = scmp.ne.s32.totalorder %s188_s2, %s130_s21  ;;  %p134_p6 = scmp.lt.u32.totalorder %s130_s21, %s188_s2 }
  0xbb   :  { %p136_p7 = pnand %p134_p6, %p131_p5 }
  0xbd   :  { %139 = shalt.err (!%p136_p7)
}
  0xbe   :  { %91 = dma.vmem_to_hbm [thread:$0]  %s89_s1, 16, %s188_s2, [#allocation3]  }
  0xbf   :  { %140 = dma.done.wait [#allocation3], 16  }
  0xc0   :  { %141 = vsyncadd [#allocation3], 4294967280 }
  0xc1   :  { %95 = vsyncpa [#allocation3], 1 }

</bundles_post_ra>
